<compile_context>
chip_gen: v5e
topology: v5e:2x2
jax: 0.10.0
libtpu: 0.0.40
codegen_flags: <defaults>
</compile_context>

<pallas_src>
import jax
import jax.numpy as jnp
from jax.experimental import pallas as pl
from jax.experimental.pallas import tpu as pltpu

_PREFERRED_LANES = (512, 256, 128)  # lane-dense last dims, widest first
_DEFAULT_LANE = 512


def _gelu_kernel(x_ref, o_ref):
    # Elementwise x * sigmoid(1.702 * x).  exp / divide land on the EUP slot,
    # the two multiplies on the VPU -> ~3 VALU ops per element; the kernel
    # stays HBM-roofline memory-bound on v5e/v6e/v7x.
    x = x_ref[...].astype(jnp.float32)
    o_ref[...] = (x * jax.nn.sigmoid(1.702 * x)).astype(o_ref.dtype)


def _tpu_vmem_bytes():
    """Trace-time VMEM capacity; conservative (v7x-sized) fallback."""
    try:
        info = pltpu.get_tpu_info()
        return int(getattr(info, "vmem_capacity_bytes", 64 << 20))
    except Exception:
        return 64 << 20


def _pick_layout(n):
    """Choose a lane-dense column width; zero-copy when it divides n."""
    for cols in _PREFERRED_LANES:
        if n % cols == 0:
            return cols, False
    return _DEFAULT_LANE, True


def _block_plan(rows, cols, itemsize, vmem_bytes):
    """Byte-sized block rows + per-generation VMEM limit."""
    # Packed-sublane granularity: 8 rows (4B), 16 (2B), 32 (1B).
    gran = max(8, 32 // max(itemsize, 1))
    if vmem_bytes >= (96 << 20):
        # v5e / v6e: 128 MiB VMEM per TC -> ~8 MiB per block buffer
        # (4x for double-buffered in+out = 32 MiB, limit raised to 64 MiB).
        target_bytes, vmem_limit = 8 << 20, 64 << 20
    else:
        # v7x (64 MiB VMEM per TC) or unknown: stay conservative.
        target_bytes, vmem_limit = 4 << 20, 32 << 20
    block_rows = max(gran, (target_bytes // (cols * itemsize)) // gran * gran)
    if rows <= block_rows:
        block_rows = rows  # single full-extent block (always legal)
    return block_rows, vmem_limit


def gelu(x):
    """Elementwise x * sigmoid(1.702 * x) for any shape/dtype via Pallas."""
    orig_shape = x.shape
    orig_dtype = x.dtype
    n = x.size
    if n == 0:
        return x
    itemsize = jnp.dtype(orig_dtype).itemsize

    cols, needs_pad = _pick_layout(n)
    if needs_pad:
        # Ragged size: pad by < cols elements (GELU(0) == 0, harmless).
        rows = pl.cdiv(n, cols)
        xf = jnp.pad(jnp.ravel(x), (0, rows * cols - n))
        x2 = xf.reshape(rows, cols)
    else:
        # Zero-copy path: pure reshape into a lane-dense (rows, cols) slab.
        rows = n // cols
        x2 = jnp.ravel(x).reshape(rows, cols)

    block_rows, vmem_limit = _block_plan(rows, cols, itemsize, _tpu_vmem_bytes())
    grid = pl.cdiv(rows, block_rows)  # partial last block is masked by Pallas

    out = pl.pallas_call(
        _gelu_kernel,
        out_shape=jax.ShapeDtypeStruct((rows, cols), orig_dtype),
        grid_spec=pl.GridSpec(
            grid=(grid,),
            in_specs=[pl.BlockSpec((block_rows, cols), lambda i: (i, 0))],
            out_specs=pl.BlockSpec((block_rows, cols), lambda i: (i, 0)),
        ),
        compiler_params=pltpu.CompilerParams(
            dimension_semantics=(pltpu.PARALLEL,),
            vmem_limit_bytes=vmem_limit,
        ),
    )(x2)

    if needs_pad:
        return out.reshape(-1)[:n].reshape(orig_shape)
    return out.reshape(orig_shape)


def _reference(x):
    xf = x.astype(jnp.float32)
    return jax.nn.sigmoid(1.702 * xf) * xf


if __name__ == "__main__":
    key = jax.random.PRNGKey(0)
    k1, k2, k3 = jax.random.split(key, 3)

    # Small deterministic input consistent with an elementwise activation.
    x = jax.random.normal(k1, (2, 4, 16, 16), dtype=jnp.float32)
    y = jax.block_until_ready(gelu(x))
    assert y.shape == x.shape and y.dtype == x.dtype
    assert jnp.allclose(y.astype(jnp.float32), _reference(x),
                        atol=1e-6, rtol=1e-6), "Pallas GELU mismatch vs reference"

    # Ragged (non-multiple) size exercises the pad/slice fallback path.
    x_odd = jax.random.normal(k2, (3, 5, 7), dtype=jnp.float32)
    y_odd = jax.block_until_ready(gelu(x_odd))
    assert y_odd.shape == x_odd.shape
    assert jnp.allclose(y_odd.astype(jnp.float32), _reference(x_odd),
                        atol=1e-6, rtol=1e-6), "Pallas GELU mismatch (odd shape)"

    # bf16 I/O exercises the 16-row sublane granularity + zero-copy path.
    x_bf = jax.random.normal(k3, (8, 384), dtype=jnp.bfloat16)
    y_bf = jax.block_until_ready(gelu(x_bf))
    assert y_bf.shape == x_bf.shape and y_bf.dtype == x_bf.dtype
    assert jnp.allclose(y_bf.astype(jnp.float32), _reference(x_bf),
                        atol=3e-2, rtol=2e-2), "Pallas GELU mismatch (bf16)"

    print("KERNEL_OK")
</pallas_src>

<mosaic_0001>
module attributes {stable_mosaic.version = 11 : i64} {
  func.func @_gelu_kernel(%arg0: i32, %arg1: memref<4x512xf32, #tpu.memory_space<vmem>>, %arg2: memref<4x512xf32, #tpu.memory_space<vmem>>) attributes {dimension_semantics = [#tpu.dimension_semantics<parallel>], iteration_bounds = array<i64: 1>, scalar_prefetch = 0 : i64, scratch_operands = 0 : i64, tpu.core_type = #tpu.core_type<tc>, window_params = [{transform_indices = @transform_0, window_bounds = array<i64: 4, 512>}, {transform_indices = @transform_1, window_bounds = array<i64: 4, 512>}]} {
    %c0 = arith.constant 0 : index
    %c0_0 = arith.constant 0 : index
    %0 = vector.load %arg1[%c0, %c0_0] : memref<4x512xf32, #tpu.memory_space<vmem>>, vector<4x512xf32>
    %cst = arith.constant 1.702000e+00 : f32
    %1 = vector.broadcast %cst : f32 to vector<4x512xf32>
    %2 = arith.mulf %1, %0 : vector<4x512xf32>
    %3 = arith.negf %2 : vector<4x512xf32>
    %4 = math.exp %3 : vector<4x512xf32>
    %cst_1 = arith.constant 1.000000e+00 : f32
    %5 = vector.broadcast %cst_1 : f32 to vector<4x512xf32>
    %6 = arith.addf %5, %4 : vector<4x512xf32>
    %7 = arith.divf %5, %6 : vector<4x512xf32>
    %8 = arith.mulf %0, %7 : vector<4x512xf32>
    %c0_2 = arith.constant 0 : index
    %c0_3 = arith.constant 0 : index
    %9 = vector.load %arg2[%c0_2, %c0_3] : memref<4x512xf32, #tpu.memory_space<vmem>>, vector<4x512xf32>
    tpu.vector_store %arg2[%c0_2, %c0_3], %8 {strides = array<i32>} : memref<4x512xf32, #tpu.memory_space<vmem>>, vector<4x512xf32>,
    return
  }
  func.func @transform_0(%arg0: i32) -> (i32, i32) {
    %c0_i32 = arith.constant 0 : i32
    %c0_i32_0 = arith.constant 0 : i32
    return %arg0, %c0_i32 : i32, i32
  }
  func.func @transform_1(%arg0: i32) -> (i32, i32) {
    %c0_i32 = arith.constant 0 : i32
    %c0_i32_0 = arith.constant 0 : i32
    return %arg0, %c0_i32 : i32, i32
  }
}

</mosaic_0001>

<bundles_post_ra>
// kernel: tpu_custom_call.1
= control target key start
LH: loop header
LB: loop body
LE: loop exit
PB: predicated region body
PF: predicated region fallthrough
CT: control target
= control target key end

     0   :  { %6 = vsyncpa [#allocation3], 0  ;;  %s168_s0 = inlined_call_operand.hbm [shape: f32[4,512], index: 0, kind: input, shape index: {}]   ;;  %s169_s1 = inlined_call_operand.hbm [shape: f32[4,512], index: 1, kind: output, shape index: {}]  }
   0x1   :  { %7 = vsyncpa [#allocation4], 0  ;;  %s13_s8 = sshll.u32 %s168_s0, 4  ;;  %s150_s9 = smov [#allocation2]   ;;  %s14_s8 = int_to_ptr.hbm [resolvable:$true] %s13_s8 }
   0x2   :  { %s15_s10 = sshll.u32 %s150_s9, 4  ;;  %s16_s10 = int_to_ptr.vmem [resolvable:$true] %s15_s10 }
   0x3   :  { %18 = dma.hbm_to_vmem [thread:$0]  %s14_s8, 256, %s16_s10, [#allocation3]  }
   0x4   :  { %146 = dma.done.wait [#allocation3], 256  }
   0x5   :  { %147 = vsyncadd [#allocation3], 4294967040  ;;  %v23_v0 = vld [vmem:[#allocation2] sm:$0xff]  ;;  %v24_v1 = vld [vmem:[#allocation2 + $0x8] sm:$0xff]  ;;  %s151_s0 = smov [#allocation5]   ;;  %s76_s14 = sshll.u32 %s169_s1, 4  ;;  %s77_s14 = int_to_ptr.hbm [resolvable:$true] %s76_s14 }
   0x6   :  { %v86_v2 = vmul.f32 -1.702, %v23_v0  ;;  %v87_v3 = vmul.f32 -1.702, %v24_v1  ;;  %s74_s11 = sshll.u32 %s151_s0, 4  ;;  %s75_s11 = int_to_ptr.vmem [resolvable:$true] %s74_s11 }
   0x8   :  { %v29_v4 = vmul.f32 1.442695, %v86_v2  ;;  %v31_v5 = vmul.f32 1.442695, %v87_v3 }
   0xa   :  { %90 = vpow2.f32 %v29_v4 }
   0xb   :  { %92 = vpow2.f32 %v31_v5 }
  0x10   :  { %v91_v6 = vpop.eup %90 }
  0x11   :  { %v93_v7 = vpop.eup %92  ;;  %v33_v8 = vadd.f32 1.0, %v91_v6 }
  0x12   :  { %v34_v9 = vadd.f32 1.0, %v93_v7 }
  0x13   :  { %94 = vrcp.f32 %v33_v8  ;;  %vm40_vm0 = vweird.f32 %v33_v8  ;;  %v46_v13 = vand.u32 2147483648, %v33_v8  ;;  %v44_v16 = vand.u32 2147483647, %v33_v8 }
  0x14   :  { %96 = vrcp.f32 %v34_v9  ;;  %v61_v17 = vand.u32 2147483648, %v34_v9  ;;  %vm55_vm2 = vweird.f32 %v34_v9  ;;  %v59_v19 = vand.u32 2147483647, %v34_v9 }
  0x15   :  { %v47_v21 = vor.u32 1.1754944e-38, %v46_v13  ;;  %vm45_vm5 = vcmp.eq.f32.partialorder %v44_v16, 8.507059e+37 }
  0x16   :  { %v62_v24 = vor.u32 1.1754944e-38, %v61_v17  ;;  %vm60_vm7 = vcmp.eq.f32.partialorder %v59_v19, 8.507059e+37 }
  0x19   :  { %v95_v10 = vpop.eup %94 }
  0x1a   :  { %v97_v11 = vpop.eup %96  ;;  %v36_v12 = vmul.f32 %v95_v10, %v33_v8  ;;  %vm41_vm1 = vweird.f32 %v95_v10 }
  0x1b   :  { %v51_v14 = vmul.f32 %v97_v11, %v34_v9  ;;  %vm56_vm3 = vweird.f32 %v97_v11  ;;  %vm42_vm4 = vmor %vm40_vm0, %vm41_vm1 }
  0x1c   :  { %v37_v15 = vsub.f32 1.0, %v36_v12  ;;  %vm57_vm6 = vmor %vm55_vm2, %vm56_vm3 }
  0x1d   :  { %v52_v18 = vsub.f32 1.0, %v51_v14 }
  0x1e   :  { %v38_v20 = vmul.f32 %v95_v10, %v37_v15 }
  0x1f   :  { %v53_v22 = vmul.f32 %v97_v11, %v52_v18 }
  0x20   :  { %v39_v23 = vadd.f32 %v95_v10, %v38_v20 }
  0x21   :  { %v54_v25 = vadd.f32 %v97_v11, %v53_v22 }
  0x22   :  { %v43_v26 = vsel %vm42_vm4, %v95_v10, %v39_v23 }
  0x23   :  { %v48_v27 = vsel %vm45_vm5, %v47_v21, %v43_v26  ;;  %v58_v28 = vsel %vm57_vm6, %v97_v11, %v54_v25 }
  0x24   :  { %v65_v29 = vmul.f32 %v48_v27, %v23_v0  ;;  %v63_v30 = vsel %vm60_vm7, %v62_v24, %v58_v28 }
  0x25   :  { %v66_v31 = vmul.f32 %v63_v30, %v24_v1 }
  0x26   :  { %67 = vst [vmem:[#allocation5] sm:$0xff] %v65_v29 }
  0x27   :  { %68 = vst [vmem:[#allocation5 + $0x8] sm:$0xff] %v66_v31 }
  0x28   :  { %79 = dma.vmem_to_hbm [thread:$0]  %s75_s11, 256, %s77_s14, [#allocation4]  }
  0x29   :  { %148 = dma.done.wait [#allocation4], 256  }
  0x2a   :  { %149 = vsyncadd [#allocation4], 4294967040 }
  0x2b   :  { %84 = vsyncpa [#allocation3], 1 }
  0x2c   :  { %85 = vsyncpa [#allocation4], 1 }

</bundles_post_ra>
